<compile_context>
chip_gen: v6e
topology: v6e:2x2x1
jax: 0.10.0
libtpu: 0.0.40
codegen_flags: <defaults>
</compile_context>

<pallas_src>
import functools

import jax
import jax.numpy as jnp
from jax.experimental import pallas as pl
from jax.experimental.pallas import tpu as pltpu


def _round_up(n: int, m: int) -> int:
    return ((n + m - 1) // m) * m


def mlp_kernel(x_ref, w1_ref, b1_ref, w2_ref, b2_ref, w3_ref, b3_ref, o_ref):
    # x streams in f32; cast to bf16 on the VMEM tile (MXU-native operand).
    x = x_ref[...].astype(jnp.bfloat16)

    # Layer 1: Linear + ReLU (bf16 matmul, f32 accumulate, f32 epilogue).
    h1 = jnp.dot(x, w1_ref[...], preferred_element_type=jnp.float32)
    h1 = jnp.maximum(h1 + b1_ref[...], 0.0).astype(jnp.bfloat16)

    # Layer 2: Linear + ReLU.
    h2 = jnp.dot(h1, w2_ref[...], preferred_element_type=jnp.float32)
    h2 = jnp.maximum(h2 + b2_ref[...], 0.0).astype(jnp.bfloat16)

    # Layer 3: Linear (no activation).
    h3 = jnp.dot(h2, w3_ref[...], preferred_element_type=jnp.float32)
    o_ref[...] = (h3 + b3_ref[...]).astype(o_ref.dtype)


def prepare_params(w1, b1, w2, b2, w3, b3):
    """Pad feature dims to multiples of 128 and cast weights to bf16 ONCE.

    Weights are stored (in_features, out_features), i.e. transposed vs PyTorch.
    Returns (params_dict, dims) where dims is a static tuple of ints.
    """
    in_f, hid = w1.shape
    n_cls = w3.shape[1]
    in_p, h_p, c_p = (_round_up(d, 128) for d in (in_f, hid, n_cls))

    def pad2(a, rows, cols):
        return jnp.pad(a, ((0, rows - a.shape[0]), (0, cols - a.shape[1])))

    params = dict(
        w1=pad2(w1, in_p, h_p).astype(jnp.bfloat16),
        w2=pad2(w2, h_p, h_p).astype(jnp.bfloat16),
        w3=pad2(w3, h_p, c_p).astype(jnp.bfloat16),
        b1=pad2(b1.reshape(1, -1), 1, h_p).astype(jnp.float32),
        b2=pad2(b2.reshape(1, -1), 1, h_p).astype(jnp.float32),
        b3=pad2(b3.reshape(1, -1), 1, c_p).astype(jnp.float32),
    )
    dims = (in_f, hid, n_cls, in_p, h_p, c_p)
    return params, dims


def _choose_batch_tiling(B: int):
    """Pick (TB, B_p). TB is a multiple of 16 (bf16 packs 2 rows/sublane).
    For B >= 256 force >= 2 grid steps (v7x megacore), TB <= 512, minimal pad."""
    if B < 256:
        tb = _round_up(max(B, 16), 16)
        return tb, tb
    best = None
    max_k = -(-B // 128)  # TB >= 128
    for k in range(2, max_k + 1):
        tb = _round_up(-(-B // k), 16)
        if tb > 512:
            continue
        bp = k * tb
        key = (bp - B, -tb)  # minimize pad rows, then prefer bigger tiles
        if best is None or key < best[0]:
            best = (key, tb, bp)
    if best is None:  # unreachable for B >= 256, defensive fallback
        tb = _round_up(-(-B // 2), 16)
        return tb, 2 * tb
    return best[1], best[2]


@functools.partial(jax.jit, static_argnames=("dims",))
def _forward_padded(x, w1, b1, w2, b2, w3, b3, *, dims):
    in_f, hid, n_cls, in_p, h_p, c_p = dims
    B = x.shape[0]
    TB, B_p = _choose_batch_tiling(B)

    # Activation stays f32; the bf16 cast happens inside the kernel.
    xp = jnp.pad(x, ((0, B_p - B), (0, in_p - in_f)))

    grid = (B_p // TB,)

    # Resident operands: constant index_map + single buffering (never re-fetched).
    def resident(shape):
        return pl.BlockSpec(shape, lambda i: (0, 0), pipeline_mode=pl.Buffered(1))

    # Scoped-VMEM budget: single-buffered weights/biases + double-buffered
    # x/out tiles + f32/bf16 intermediates, with headroom; capped for v7x.
    weights_bytes = 2 * (in_p * h_p + h_p * h_p + h_p * c_p) + 4 * (2 * h_p + c_p)
    stream_bytes = 2 * (4 * TB * in_p + 4 * TB * c_p)
    interm_bytes = 2 * (4 + 2) * TB * h_p
    vmem_limit = min(
        2 * (weights_bytes + stream_bytes + interm_bytes) + (16 << 20), 64 << 20)

    flops = 2 * B_p * (in_p * h_p + h_p * h_p + h_p * c_p)
    bytes_accessed = (
        4 * B_p * in_p                                   # f32 x
        + 2 * (in_p * h_p + h_p * h_p + h_p * c_p)       # bf16 weights
        + 4 * (2 * h_p + c_p)                            # f32 biases
        + 4 * B_p * c_p                                  # f32 output
    )

    out = pl.pallas_call(
        mlp_kernel,
        out_shape=jax.ShapeDtypeStruct((B_p, c_p), jnp.float32),
        grid=grid,
        in_specs=[
            pl.BlockSpec((TB, in_p), lambda i: (i, 0)),  # x tile streams
            resident((in_p, h_p)),                       # w1 resident
            resident((1, h_p)),                          # b1 resident
            resident((h_p, h_p)),                        # w2 resident
            resident((1, h_p)),                          # b2 resident
            resident((h_p, c_p)),                        # w3 resident
            resident((1, c_p)),                          # b3 resident
        ],
        out_specs=pl.BlockSpec((TB, c_p), lambda i: (i, 0)),
        compiler_params=pltpu.CompilerParams(
            dimension_semantics=("parallel",),
            vmem_limit_bytes=int(vmem_limit)),
        cost_estimate=pl.CostEstimate(
            flops=int(flops), transcendentals=0,
            bytes_accessed=int(bytes_accessed)),
    )(xp, w1, b1, w2, b2, w3, b3)

    return out[:B, :n_cls]


def neural_net_forward(x, params, dims):
    """NeuralNet forward: x (B, input_size) f32 -> (B, num_classes) f32."""
    p = params
    return _forward_padded(x, p["w1"], p["b1"], p["w2"], p["b2"],
                           p["w3"], p["b3"], dims=dims)


def init_params(key, input_size, hidden_size, num_classes):
    """Deterministic PyTorch-style (Kaiming-uniform-ish) init.
    Weights stored already transposed to (in_features, out_features)."""
    ks = jax.random.split(key, 6)

    def linear(kw, kb, fan_in, fan_out):
        bound = 1.0 / jnp.sqrt(fan_in)
        w = jax.random.uniform(kw, (fan_in, fan_out), jnp.float32, -bound, bound)
        b = jax.random.uniform(kb, (fan_out,), jnp.float32, -bound, bound)
        return w, b

    w1, b1 = linear(ks[0], ks[1], input_size, hidden_size)
    w2, b2 = linear(ks[2], ks[3], hidden_size, hidden_size)
    w3, b3 = linear(ks[4], ks[5], hidden_size, num_classes)
    return w1, b1, w2, b2, w3, b3


if __name__ == "__main__":
    key = jax.random.PRNGKey(0)
    k_x, k_p = jax.random.split(key)

    batch = 8
    input_size = 32      # e.g. bag-of-words vocabulary size (small for demo)
    hidden_size = 32
    num_classes = 8

    x = jax.random.normal(k_x, (batch, input_size), dtype=jnp.float32)
    w1, b1, w2, b2, w3, b3 = init_params(k_p, input_size, hidden_size, num_classes)

    # Weight prep (pad + bf16 cast) happens once, outside the forward pass.
    params, dims = prepare_params(w1, b1, w2, b2, w3, b3)

    out = neural_net_forward(x, params, dims)
    out = jax.block_until_ready(out)
    assert out.shape == (batch, num_classes)
    assert out.dtype == jnp.float32

    # Reference 1: mirrors the kernel's bf16-operand / f32-accumulate precision.
    bf = jnp.bfloat16
    r = jnp.dot(x.astype(bf), w1.astype(bf), preferred_element_type=jnp.float32)
    r = jnp.maximum(r + b1, 0.0).astype(bf)
    r = jnp.dot(r, w2.astype(bf), preferred_element_type=jnp.float32)
    r = jnp.maximum(r + b2, 0.0).astype(bf)
    r = jnp.dot(r, w3.astype(bf), preferred_element_type=jnp.float32)
    ref_bf16 = r + b3
    assert jnp.allclose(out, ref_bf16, atol=2e-2, rtol=2e-2)

    # Reference 2: pure f32 module semantics (loose tolerance due to bf16 matmuls).
    r = jnp.maximum(x @ w1 + b1, 0.0)
    r = jnp.maximum(r @ w2 + b2, 0.0)
    ref_f32 = r @ w3 + b3
    assert jnp.allclose(out, ref_f32, atol=1e-1, rtol=5e-2)

    print("KERNEL_OK")
</pallas_src>

<mosaic_0001>
module attributes {stable_mosaic.version = 11 : i64} {
  func.func @mlp_kernel(%arg0: i32, %arg1: memref<16x128xf32, #tpu.memory_space<vmem>>, %arg2: memref<128x128xbf16, #tpu.memory_space<vmem>>, %arg3: memref<1x128xf32, #tpu.memory_space<vmem>>, %arg4: memref<128x128xbf16, #tpu.memory_space<vmem>>, %arg5: memref<1x128xf32, #tpu.memory_space<vmem>>, %arg6: memref<128x128xbf16, #tpu.memory_space<vmem>>, %arg7: memref<1x128xf32, #tpu.memory_space<vmem>>, %arg8: memref<16x128xf32, #tpu.memory_space<vmem>>) attributes {dimension_semantics = [#tpu.dimension_semantics<parallel>], iteration_bounds = array<i64: 1>, scalar_prefetch = 0 : i64, scratch_operands = 0 : i64, tpu.core_type = #tpu.core_type<tc>, window_params = [{transform_indices = @transform_0, window_bounds = array<i64: 16, 128>}, {pipeline_mode = #tpu.pipeline_mode<synchronous>, transform_indices = @transform_1, window_bounds = array<i64: 128, 128>}, {pipeline_mode = #tpu.pipeline_mode<synchronous>, transform_indices = @transform_2, window_bounds = array<i64: 1, 128>}, {pipeline_mode = #tpu.pipeline_mode<synchronous>, transform_indices = @transform_3, window_bounds = array<i64: 128, 128>}, {pipeline_mode = #tpu.pipeline_mode<synchronous>, transform_indices = @transform_4, window_bounds = array<i64: 1, 128>}, {pipeline_mode = #tpu.pipeline_mode<synchronous>, transform_indices = @transform_5, window_bounds = array<i64: 128, 128>}, {pipeline_mode = #tpu.pipeline_mode<synchronous>, transform_indices = @transform_6, window_bounds = array<i64: 1, 128>}, {transform_indices = @transform_7, window_bounds = array<i64: 16, 128>}]} {
    %c0 = arith.constant 0 : index
    %c0_0 = arith.constant 0 : index
    %0 = vector.load %arg1[%c0, %c0_0] : memref<16x128xf32, #tpu.memory_space<vmem>>, vector<16x128xf32>
    %1 = arith.truncf %0 : vector<16x128xf32> to vector<16x128xbf16>
    %c0_1 = arith.constant 0 : index
    %c0_2 = arith.constant 0 : index
    %2 = vector.load %arg2[%c0_1, %c0_2] : memref<128x128xbf16, #tpu.memory_space<vmem>>, vector<128x128xbf16>
    %cst = arith.constant dense<0.000000e+00> : vector<16x128xf32>
    %3 = tpu.matmul %1, %2, %cst {dimension_numbers = #tpu.dot_dimension_numbers<[1], [0], [0], [1], [0, 0, 1, 1], [], []>} : vector<16x128xbf16>, vector<128x128xbf16>, vector<16x128xf32> -> vector<16x128xf32>
    %c0_3 = arith.constant 0 : index
    %c0_4 = arith.constant 0 : index
    %4 = vector.load %arg3[%c0_3, %c0_4] : memref<1x128xf32, #tpu.memory_space<vmem>>, vector<1x128xf32>
    %5 = vector.broadcast %4 : vector<1x128xf32> to vector<16x128xf32>
    %6 = arith.addf %3, %5 : vector<16x128xf32>
    %cst_5 = arith.constant 0.000000e+00 : f32
    %7 = vector.broadcast %cst_5 : f32 to vector<16x128xf32>
    %8 = arith.maximumf %6, %7 : vector<16x128xf32>
    %9 = arith.truncf %8 : vector<16x128xf32> to vector<16x128xbf16>
    %c0_6 = arith.constant 0 : index
    %c0_7 = arith.constant 0 : index
    %10 = vector.load %arg4[%c0_6, %c0_7] : memref<128x128xbf16, #tpu.memory_space<vmem>>, vector<128x128xbf16>
    %cst_8 = arith.constant dense<0.000000e+00> : vector<16x128xf32>
    %11 = tpu.matmul %9, %10, %cst_8 {dimension_numbers = #tpu.dot_dimension_numbers<[1], [0], [0], [1], [0, 0, 1, 1], [], []>} : vector<16x128xbf16>, vector<128x128xbf16>, vector<16x128xf32> -> vector<16x128xf32>
    %c0_9 = arith.constant 0 : index
    %c0_10 = arith.constant 0 : index
    %12 = vector.load %arg5[%c0_9, %c0_10] : memref<1x128xf32, #tpu.memory_space<vmem>>, vector<1x128xf32>
    %13 = vector.broadcast %12 : vector<1x128xf32> to vector<16x128xf32>
    %14 = arith.addf %11, %13 : vector<16x128xf32>
    %cst_11 = arith.constant 0.000000e+00 : f32
    %15 = vector.broadcast %cst_11 : f32 to vector<16x128xf32>
    %16 = arith.maximumf %14, %15 : vector<16x128xf32>
    %17 = arith.truncf %16 : vector<16x128xf32> to vector<16x128xbf16>
    %c0_12 = arith.constant 0 : index
    %c0_13 = arith.constant 0 : index
    %18 = vector.load %arg6[%c0_12, %c0_13] : memref<128x128xbf16, #tpu.memory_space<vmem>>, vector<128x128xbf16>
    %cst_14 = arith.constant dense<0.000000e+00> : vector<16x128xf32>
    %19 = tpu.matmul %17, %18, %cst_14 {dimension_numbers = #tpu.dot_dimension_numbers<[1], [0], [0], [1], [0, 0, 1, 1], [], []>} : vector<16x128xbf16>, vector<128x128xbf16>, vector<16x128xf32> -> vector<16x128xf32>
    %c0_15 = arith.constant 0 : index
    %c0_16 = arith.constant 0 : index
    %20 = vector.load %arg7[%c0_15, %c0_16] : memref<1x128xf32, #tpu.memory_space<vmem>>, vector<1x128xf32>
    %21 = vector.broadcast %20 : vector<1x128xf32> to vector<16x128xf32>
    %22 = arith.addf %19, %21 : vector<16x128xf32>
    %c0_17 = arith.constant 0 : index
    %c0_18 = arith.constant 0 : index
    %23 = vector.load %arg8[%c0_17, %c0_18] : memref<16x128xf32, #tpu.memory_space<vmem>>, vector<16x128xf32>
    tpu.vector_store %arg8[%c0_17, %c0_18], %22 {strides = array<i32>} : memref<16x128xf32, #tpu.memory_space<vmem>>, vector<16x128xf32>,
    return
  }
  func.func @transform_0(%arg0: i32) -> (i32, i32) {
    %c0_i32 = arith.constant 0 : i32
    %c0_i32_0 = arith.constant 0 : i32
    return %arg0, %c0_i32 : i32, i32
  }
  func.func @transform_1(%arg0: i32) -> (i32, i32) {
    %c0_i32 = arith.constant 0 : i32
    %c0_i32_0 = arith.constant 0 : i32
    %c0_i32_1 = arith.constant 0 : i32
    return %c0_i32, %c0_i32_0 : i32, i32
  }
  func.func @transform_2(%arg0: i32) -> (i32, i32) {
    %c0_i32 = arith.constant 0 : i32
    %c0_i32_0 = arith.constant 0 : i32
    %c0_i32_1 = arith.constant 0 : i32
    return %c0_i32, %c0_i32_0 : i32, i32
  }
  func.func @transform_3(%arg0: i32) -> (i32, i32) {
    %c0_i32 = arith.constant 0 : i32
    %c0_i32_0 = arith.constant 0 : i32
    %c0_i32_1 = arith.constant 0 : i32
    return %c0_i32, %c0_i32_0 : i32, i32
  }
  func.func @transform_4(%arg0: i32) -> (i32, i32) {
    %c0_i32 = arith.constant 0 : i32
    %c0_i32_0 = arith.constant 0 : i32
    %c0_i32_1 = arith.constant 0 : i32
    return %c0_i32, %c0_i32_0 : i32, i32
  }
  func.func @transform_5(%arg0: i32) -> (i32, i32) {
    %c0_i32 = arith.constant 0 : i32
    %c0_i32_0 = arith.constant 0 : i32
    %c0_i32_1 = arith.constant 0 : i32
    return %c0_i32, %c0_i32_0 : i32, i32
  }
  func.func @transform_6(%arg0: i32) -> (i32, i32) {
    %c0_i32 = arith.constant 0 : i32
    %c0_i32_0 = arith.constant 0 : i32
    %c0_i32_1 = arith.constant 0 : i32
    return %c0_i32, %c0_i32_0 : i32, i32
  }
  func.func @transform_7(%arg0: i32) -> (i32, i32) {
    %c0_i32 = arith.constant 0 : i32
    %c0_i32_0 = arith.constant 0 : i32
    return %arg0, %c0_i32 : i32, i32
  }
}

</mosaic_0001>

<bundles_post_ra>
// kernel: _forward_padded.1
= control target key start
LH: loop header
LB: loop body
LE: loop exit
PB: predicated region body
PF: predicated region fallthrough
CT: control target
= control target key end

     0   :  { %12 = vsyncpa [#allocation3], 0  ;;  %s737_s0 = inlined_call_operand.vmem [shape: f32[16,128], index: 0, kind: input, shape index: {}]   ;;  %s738_s1 = inlined_call_operand.hbm [shape: bf16[128,128], index: 1, kind: input, shape index: {}]   ;;  %s739_s2 = inlined_call_operand.vmem [shape: f32[1,128], index: 2, kind: input, shape index: {}]   ;;  %s740_s3 = inlined_call_operand.hbm [shape: bf16[128,128], index: 3, kind: input, shape index: {}]   ;;  %s741_s4 = inlined_call_operand.vmem [shape: f32[1,128], index: 4, kind: input, shape index: {}]   ;;  %s742_s5 = inlined_call_operand.hbm [shape: bf16[128,128], index: 5, kind: input, shape index: {}]   ;;  %s743_s6 = inlined_call_operand.vmem [shape: f32[1,128], index: 6, kind: input, shape index: {}]   ;;  %s744_s7 = inlined_call_operand.vmem [shape: f32[16,128], index: 7, kind: output, shape index: {}]  }
   0x1   :  { %13 = vsyncpa [#allocation5], 0  ;;  %s630_s24 = smov [#allocation4]   ;;  %s631_s26 = smov [#allocation2]  }
   0x2   :  { %s35_s25 = sshll.u32 %s630_s24, 4  ;;  %s21_s27 = sshll.u32 %s631_s26, 4  ;;  %s36_s25 = int_to_ptr.vmem [resolvable:$true] %s35_s25  ;;  %s22_s27 = int_to_ptr.vmem [resolvable:$true] %s21_s27 }
   0x3   :  { %s574_s28 = scalar_lea.vmem %s36_s25, 1024  ;;  %p579_p1 = scmp.lt.s32.totalorder %s36_s25, %s36_s25 }
   0x4   :  { %p575_p0 = scmp.ne.s32.totalorder %s36_s25, %s574_s28  ;;  %p580_p2 = scmp.lt.s32.totalorder %s574_s28, %s574_s28 }
   0x6   :  { %p581_p3 = por %p580_p2, %p579_p1 }
   0x8   :  { %p582_p4 = pnand %p581_p3, %p575_p0 }
   0xa   :  { %585 = shalt.err (!%p582_p4)
}
   0xb   :  { %s632_s29 = smov 64   ;;  %s633_s30 = smov 4  }
   0xc   :  { %41 = dma.hbm_to_vmem [thread:$0]  %s740_s3, 1024, %s36_s25, [#allocation5], %s632_s29, %s632_s29, %s633_s30  }
   0xd   :  { %s594_s10 = scalar_lea.vmem %s22_s27, 1024  ;;  %p599_p6 = scmp.lt.s32.totalorder %s22_s27, %s22_s27 }
   0xe   :  { %p595_p5 = scmp.ne.s32.totalorder %s22_s27, %s594_s10  ;;  %p600_p7 = scmp.lt.s32.totalorder %s594_s10, %s594_s10 }
  0x10   :  { %p601_p8 = por %p600_p7, %p599_p6 }
  0x12   :  { %p602_p9 = pnand %p601_p8, %p595_p5 }
  0x14   :  { %605 = shalt.err (!%p602_p9)
}
  0x15   :  { %27 = dma.hbm_to_vmem [thread:$0]  %s738_s1, 1024, %s22_s27, [#allocation3], %s632_s29, %s632_s29, %s633_s30  }
  0x16   :  { %s634_s13 = smov [#allocation6]  }
  0x17   :  { %s49_s14 = sshll.u32 %s634_s13, 4  ;;  %s50_s14 = int_to_ptr.vmem [resolvable:$true] %s49_s14 }
  0x18   :  { %s614_s15 = scalar_lea.vmem %s50_s14, 1024  ;;  %p619_p11 = scmp.lt.s32.totalorder %s50_s14, %s50_s14 }
  0x19   :  { %p615_p10 = scmp.ne.s32.totalorder %s50_s14, %s614_s15  ;;  %p620_p12 = scmp.lt.s32.totalorder %s614_s15, %s614_s15 }
  0x1b   :  { %p621_p13 = por %p620_p12, %p619_p11 }
  0x1d   :  { %p622_p0 = pnand %p621_p13, %p615_p10 }
  0x1f   :  { %625 = shalt.err (!%p622_p0)
}
  0x20   :  { %55 = dma.hbm_to_vmem [thread:$0]  %s742_s5, 1024, %s50_s14, [#allocation5], %s632_s29, %s632_s29, %s633_s30  }
  0x21   :  { %626 = dma.done.wait [#allocation3], 1024  }
  0x22   :  { %627 = vsyncadd [#allocation3], 4294966272 }
  0x23   :  { %628 = dma.done.wait [#allocation5], 2048  }
  0x24   :  { %629 = vsyncadd [#allocation5], 4294965248  ;;  %v635_v0 = vmov 0.0   ;;  %vm636_vm0 = vmmov 0   ;;  %v542_v1 = vld [vmem:[#allocation2 + $0x38] sm:$0xff]   ;;  %v543_v2 = vld [vmem:[#allocation2 + $0x30] sm:$0xff]  }
  0x25   :  { %475 = vmatprep.subr.bf16.mxu0 %v635_v0  ;;  %491 = vmatprep.mubr.msk.bf16.mxu0 %vm636_vm0, %v635_v0  ;;  %v544_v3 = vld [vmem:[#allocation2 + $0x28] sm:$0xff]   ;;  %v550_v4 = vld [vmem:[#allocation4 + $0x38] sm:$0xff]   ;;  %v545_v5 = vld [vmem:[#allocation2 + $0x20] sm:$0xff]  }
  0x26   :  { %495 = vmatprep.subr.bf16.mxu1 %v635_v0  ;;  %511 = vmatprep.mubr.msk.bf16.mxu1 %vm636_vm0, %v635_v0  ;;  %v551_v6 = vld [vmem:[#allocation4 + $0x30] sm:$0xff]   ;;  %v546_v7 = vld [vmem:[#allocation2 + $0x18] sm:$0xff]   ;;  %v552_v8 = vld [vmem:[#allocation4 + $0x28] sm:$0xff]  }
  0x27   :  { %476 = vmatpush3.bf16.msra.mxu0 %v542_v1  ;;  %496 = vmatpush3.bf16.msra.mxu1 %v550_v4  ;;  %v547_v9 = vld [vmem:[#allocation2 + $0x10] sm:$0xff]   ;;  %v553_v10 = vld [vmem:[#allocation4 + $0x20] sm:$0xff]   ;;  %v548_v11 = vld [vmem:[#allocation2 + $0x8] sm:$0xff]  }
  0x28   :  { %477 = vmatprep.subr.bf16.mxu0 %v635_v0  ;;  %497 = vmatprep.subr.bf16.mxu1 %v635_v0  ;;  %v554_v12 = vld [vmem:[#allocation4 + $0x18] sm:$0xff]   ;;  %v549_v13 = vld [vmem:[#allocation2] sm:$0xff]   ;;  %v69_v15 = vld [vmem:[%s737_s0 + $0x8] sm:$0xff] }
  0x29   :  { %v68_v14 = vld [vmem:[%s737_s0] sm:$0xff]  ;;  %v555_v17 = vld [vmem:[#allocation4 + $0x10] sm:$0xff]   ;;  %v556_v18 = vld [vmem:[#allocation4 + $0x8] sm:$0xff]  }
  0x2a   :  { %v70_v16 = vpack.c.bf16 %v69_v15, %v68_v14  ;;  %v557_v19 = vld [vmem:[#allocation4] sm:$0xff]   ;;  %v558_v20 = vld [vmem:[#allocation6 + $0x38] sm:$0xff]   ;;  %v559_v21 = vld [vmem:[#allocation6 + $0x30] sm:$0xff]  }
  0x2b   :  { %478 = vmatpush3.bf16.msra.mxu0 %v543_v2  ;;  %498 = vmatpush3.bf16.msra.mxu1 %v551_v6  ;;  %v560_v22 = vld [vmem:[#allocation6 + $0x28] sm:$0xff]   ;;  %v561_v23 = vld [vmem:[#allocation6 + $0x20] sm:$0xff]   ;;  %v562_v24 = vld [vmem:[#allocation6 + $0x18] sm:$0xff]  }
  0x2c   :  { %479 = vmatprep.subr.bf16.mxu0 %v635_v0  ;;  %499 = vmatprep.subr.bf16.mxu1 %v635_v0  ;;  %v421_v25 = vld [vmem:[%s739_s2] ss:$0 sm:$0xff]  ;;  %v563_v35 = vld [vmem:[#allocation6 + $0x10] sm:$0xff]   ;;  %v564_v36 = vld [vmem:[#allocation6 + $0x8] sm:$0xff]  }
  0x2d   :  { %v565_v37 = vld [vmem:[#allocation6] sm:$0xff]  }
  0x2e   :  { %v430_v38 = vld [vmem:[%s741_s4] ss:$0 sm:$0xff] }
  0x2f   :  { %480 = vmatpush3.bf16.msra.mxu0 %v544_v3  ;;  %500 = vmatpush3.bf16.msra.mxu1 %v552_v8  ;;  %v439_v48 = vld [vmem:[%s743_s6] ss:$0 sm:$0xff] }
  0x30   :  { %481 = vmatprep.subr.bf16.mxu0 %v635_v0  ;;  %501 = vmatprep.subr.bf16.mxu1 %v635_v0 }
  0x33   :  { %482 = vmatpush3.bf16.msra.mxu0 %v545_v5  ;;  %502 = vmatpush3.bf16.msra.mxu1 %v553_v10 }
  0x34   :  { %483 = vmatprep.subr.bf16.mxu0 %v635_v0  ;;  %503 = vmatprep.subr.bf16.mxu1 %v635_v0 }
  0x37   :  { %484 = vmatpush3.bf16.msra.mxu0 %v546_v7  ;;  %504 = vmatpush3.bf16.msra.mxu1 %v554_v12 }
  0x38   :  { %485 = vmatprep.subr.bf16.mxu0 %v635_v0  ;;  %505 = vmatprep.subr.bf16.mxu1 %v635_v0 }
  0x3b   :  { %486 = vmatpush3.bf16.msra.mxu0 %v547_v9  ;;  %506 = vmatpush3.bf16.msra.mxu1 %v555_v17 }
  0x3c   :  { %487 = vmatprep.subr.bf16.mxu0 %v635_v0  ;;  %507 = vmatprep.subr.bf16.mxu1 %v635_v0 }
  0x3f   :  { %488 = vmatpush3.bf16.msra.mxu0 %v548_v11  ;;  %508 = vmatpush3.bf16.msra.mxu1 %v556_v18 }
  0x40   :  { %489 = vmatprep.subr.bf16.mxu0 %v635_v0  ;;  %509 = vmatprep.subr.bf16.mxu1 %v635_v0 }
  0x43   :  { %490 = vmatpush3.bf16.msra.mxu0 %v549_v13  ;;  %510 = vmatpush3.bf16.msra.mxu1 %v557_v19 }
  0x44   :  { %515 = vmatprep.subr.bf16.mxu0 %v635_v0 }
  0x46   :  { %492 = vmatmul.mubr.bf16.vlgmr.msra.gmra.mxu0 %v70_v16 }
  0x47   :  { %531 = vmatprep.mubr.msk.bf16.mxu0 %vm636_vm0, %v635_v0  ;;  %516 = vmatpush3.bf16.msra.mxu0 %v558_v20 }
  0x48   :  { %517 = vmatprep.subr.bf16.mxu0 %v635_v0 }
  0x4b   :  { %518 = vmatpush3.bf16.msra.mxu0 %v559_v21 }
  0x4c   :  { %519 = vmatprep.subr.bf16.mxu0 %v635_v0 }
  0x4f   :  { %520 = vmatpush3.bf16.msra.mxu0 %v560_v22 }
  0x50   :  { %521 = vmatprep.subr.bf16.mxu0 %v635_v0 }
  0x53   :  { %522 = vmatpush3.bf16.msra.mxu0 %v561_v23 }
  0x54   :  { %523 = vmatprep.subr.bf16.mxu0 %v635_v0 }
  0x57   :  { %524 = vmatpush3.bf16.msra.mxu0 %v562_v24 }
  0x58   :  { %525 = vmatprep.subr.bf16.mxu0 %v635_v0 }
  0x5b   :  { %526 = vmatpush3.bf16.msra.mxu0 %v563_v35 }
  0x5c   :  { %527 = vmatprep.subr.bf16.mxu0 %v635_v0 }
  0x5f   :  { %528 = vmatpush3.bf16.msra.mxu0 %v564_v36 }
  0x60   :  { %529 = vmatprep.subr.bf16.mxu0 %v635_v0 }
  0x63   :  { %530 = vmatpush3.bf16.msra.mxu0 %v565_v37 }
 0x106   :  { %v176_v26 = vpop.f32.mrf.mxu0 }
 0x107   :  { %v177_v28 = vadd.f32 %v421_v25, %v176_v26 }
 0x108   :  { %v493_v27 = vpop.f32.mrf.mxu0 }
 0x109   :  { %v183_v32 = vmax.f32 %v177_v28, 0.0 }
 0x10a   :  { %v179_v29 = vpop.f32.mrf.mxu0 }
 0x10b   :  { %v180_v30 = vadd.f32 %v421_v25, %v179_v29 }
 0x10c   :  { %v494_v31 = vpop.f32.mrf.mxu0 }
 0x10d   :  { %v184_v33 = vmax.f32 %v180_v30, 0.0 }
 0x10f   :  { %v185_v34 = vpack.c.bf16 %v184_v33, %v183_v32 }
 0x111   :  { %512 = vmatmul.mubr.bf16.vlgmr.msra.gmra.mxu1 %v185_v34 }
 0x1d1   :  { %v291_v39 = vpop.f32.mrf.mxu1 }
 0x1d2   :  { %v292_v41 = vadd.f32 %v430_v38, %v291_v39 }
 0x1d3   :  { %v513_v40 = vpop.f32.mrf.mxu1 }
 0x1d4   :  { %v298_v45 = vmax.f32 %v292_v41, 0.0 }
 0x1d5   :  { %v294_v42 = vpop.f32.mrf.mxu1 }
 0x1d6   :  { %v295_v43 = vadd.f32 %v430_v38, %v294_v42 }
 0x1d7   :  { %v514_v44 = vpop.f32.mrf.mxu1 }
 0x1d8   :  { %v299_v46 = vmax.f32 %v295_v43, 0.0 }
 0x1da   :  { %v300_v47 = vpack.c.bf16 %v299_v46, %v298_v45 }
 0x1dc   :  { %532 = vmatmul.mubr.bf16.vlgmr.msra.gmra.mxu0 %v300_v47 }
 0x29c   :  { %v406_v49 = vpop.f32.mrf.mxu0 }
 0x29d   :  { %v407_v50 = vadd.f32 %v439_v48, %v406_v49 }
 0x29e   :  { %v533_v51 = vpop.f32.mrf.mxu0 }
 0x29f   :  { %413 = vst [vmem:[%s744_s7] sm:$0xff] %v407_v50 }
 0x2a0   :  { %v409_v52 = vpop.f32.mrf.mxu0 }
 0x2a1   :  { %v410_v53 = vadd.f32 %v439_v48, %v409_v52 }
 0x2a2   :  { %v534_v54 = vpop.f32.mrf.mxu0 }
 0x2a3   :  { %414 = vst [vmem:[%s744_s7 + $0x8] sm:$0xff] %v410_v53 }
 0x2a4   :  { %419 = vsyncpa [#allocation3], 1 }
 0x2a5   :  { %420 = vsyncpa [#allocation5], 1 }

</bundles_post_ra>
